<compile_context>
chip_gen: v7x
topology: tpu7x:2x2x1
jax: 0.10.0
libtpu: 0.0.40
codegen_flags: <defaults>
</compile_context>

<pallas_src>
import functools

import jax
import jax.numpy as jnp
from jax.experimental import pallas as pl
from jax.experimental.pallas import tpu as pltpu


def _round_up(n, m):
    return ((n + m - 1) // m) * m


def _next_pow2(n):
    p = 1
    while p < n:
        p *= 2
    return p


def _affine_kernel(ids_ref, x_ref, wt_ref, b_ref, o_ref):
    # ids_ref: SMEM scalar-prefetch ref, consumed only by the index_maps.
    # x_ref : (RB, PD)   lane-packed rows of one patch group
    # wt_ref: (PD, PD)   block-diagonal pre-transposed weight (patch dim squeezed)
    # b_ref : (1, PD)    pack-tiled bias row (patch dim squeezed)
    del ids_ref
    acc = jnp.dot(x_ref[...], wt_ref[...], preferred_element_type=jnp.float32)
    # Bias broadcast-add on the VPU; keep math in f32, cast only at the store.
    o_ref[...] = (acc + b_ref[...]).astype(o_ref.dtype)


@functools.partial(jax.jit, static_argnames=("pack", "row_block", "groups"))
def _affine_forward_packed(arrays, wt_bd, b_bd, *, pack, row_block, groups):
    """Fused pack -> single pallas_call -> unpack.

    arrays : tuple of (n_k, dim) segments (original, unpadded), original `work` order.
    wt_bd  : (P, PD, PD)  block_diag(W^T x pack) per patch.
    b_bd   : (P, 1, PD)   pack-tiled bias per patch.
    groups : static tuple of (patch_id, (array_index, ...)), sorted by patch_id.
    """
    dim = arrays[0].shape[-1]
    pdim = pack * dim

    x_parts = []
    block_ids = []
    meta = []            # (array_index, group packed-row offset, row offset in group, n)
    blk_off = 0
    for pid, idxs in groups:
        segs = [arrays[k] for k in idxs]
        g = segs[0] if len(segs) == 1 else jnp.concatenate(segs, axis=0)
        n_g = g.shape[0]
        # packed rows, padded up to the common row block
        n_packed = _round_up(-(-n_g // pack), row_block)
        pad_rows = n_packed * pack - n_g
        if pad_rows:
            g = jnp.pad(g, ((0, pad_rows), (0, 0)))
        x_parts.append(g.reshape(n_packed, pdim))
        block_ids.extend([pid] * (n_packed // row_block))
        row_off = 0
        for k in idxs:
            n = arrays[k].shape[0]
            meta.append((k, blk_off, row_off, n))
            row_off += n
        blk_off += n_packed

    x_stacked = x_parts[0] if len(x_parts) == 1 else jnp.concatenate(x_parts, axis=0)
    total_packed = x_stacked.shape[0]
    num_blocks = total_packed // row_block
    ids = jnp.asarray(block_ids, dtype=jnp.int32)

    grid_spec = pltpu.PrefetchScalarGridSpec(
        num_scalar_prefetch=1,
        grid=(num_blocks,),
        in_specs=[
            pl.BlockSpec((row_block, pdim), lambda b, ids: (b, 0)),
            pl.BlockSpec((pl.Squeezed(), pdim, pdim), lambda b, ids: (ids[b], 0, 0)),
            pl.BlockSpec((pl.Squeezed(), 1, pdim), lambda b, ids: (ids[b], 0, 0)),
        ],
        out_specs=pl.BlockSpec((row_block, pdim), lambda b, ids: (b, 0)),
    )

    # VMEM guard: only kicks in for very large dim (weight double-buffer), otherwise
    # keep the compiler's default scoped limit (v7x: 32 MiB scoped / 64 MiB physical).
    itemsize = jnp.dtype(x_stacked.dtype).itemsize
    est = 2 * (pdim * pdim + 2 * row_block * pdim + pdim) * itemsize
    vmem_limit = min(est + (8 << 20), 64 << 20) if est > (24 << 20) else None

    out = pl.pallas_call(
        _affine_kernel,
        out_shape=jax.ShapeDtypeStruct((total_packed, pdim), x_stacked.dtype),
        grid_spec=grid_spec,
        compiler_params=pltpu.CompilerParams(
            dimension_semantics=("parallel",),
            vmem_limit_bytes=vmem_limit,
        ),
    )(ids, x_stacked, wt_bd, b_bd)

    # Unpack: undo the lane packing, then slice each original segment back out.
    out_rows = out.reshape(total_packed * pack, dim)
    results = [None] * len(arrays)
    for k, g_blk_off, row_off, n in meta:
        start = g_blk_off * pack + row_off
        results[k] = out_rows[start:start + n]
    return tuple(results)


class AffineModel:
    """JAX/Pallas port of the PyTorch AffineModel (n_patches independent Linear(dim, dim))."""

    def __init__(self, dim, n_patches, key):
        self.dim = dim
        self.n_patches = n_patches
        # Lane-packing factor: pack `pack` logical rows into one 128-lane row so loads,
        # stores and the MXU contraction are lane-dense (dim=32 -> pack=4 -> 128 wide).
        self.pack = 128 // dim if (dim < 128 and 128 % dim == 0) else 1

        bound = 1.0 / (dim ** 0.5)
        weights, biases = [], []
        for p in range(n_patches):
            if p == 0:
                # fixed layer: identity weight, zero bias (non-trainable in torch)
                weights.append(jnp.eye(dim, dtype=jnp.float32))
                biases.append(jnp.zeros((dim,), jnp.float32))
            else:
                key, kw, kb = jax.random.split(key, 3)
                weights.append(
                    jax.random.uniform(kw, (dim, dim), jnp.float32, -bound, bound)
                )
                biases.append(
                    jax.random.uniform(kb, (dim,), jnp.float32, -bound, bound)
                )
        # Original layout kept for reference checking.
        self.weights = weights
        self.biases = biases

        # Kernel-side parameters, built ONCE: pre-transposed + block-diagonal weights
        # (x_packed @ block_diag(W^T x pack) == per-row x @ W^T) and pack-tiled biases.
        eye_p = jnp.eye(self.pack, dtype=jnp.float32)
        self.wt_bd = jnp.stack([jnp.kron(eye_p, w.T) for w in weights], axis=0)      # (P, PD, PD)
        self.b_bd = jnp.stack(
            [jnp.tile(b, self.pack).reshape(1, self.pack * dim) for b in biases], axis=0
        )                                                                             # (P, 1, PD)
        # TODO(synk): on v6e/v7x, cast wt_bd and the stacked inputs to bfloat16 (keep the
        # f32 accumulate in the kernel) to halve HBM/DMA bytes; kept f32 here so the
        # 1e-5 self-check holds identically on all generations (incl. v5e VPU).

    def __call__(self, patch_intersection):
        segments = []   # (tag, array, patch_id)
        for (i, j), (X, Y) in patch_intersection.items():
            segments.append((((i, j), 0), X, i))
            segments.append((((i, j), 1), Y, j))

        parts = {}
        work = []
        for tag, arr, pid in segments:
            if pid == 0:
                # Fixed identity layer, zero bias: output == input (JAX arrays are
                # immutable, so returning the same array is safe).
                parts[tag] = arr
            else:
                work.append((tag, arr, pid))

        if work:
            # Group by patch id (sorted) so consecutive grid steps reuse the same
            # weight/bias block index (Pallas skips the weight re-DMA) and short
            # segments of the same patch share row blocks.
            by_pid = {}
            for idx, (_, _, pid) in enumerate(work):
                by_pid.setdefault(pid, []).append(idx)
            groups = tuple((pid, tuple(by_pid[pid])) for pid in sorted(by_pid))

            pack = self.pack
            max_group_packed = max(
                -(-sum(work[k][1].shape[0] for k in idxs) // pack) for _, idxs in groups
            )
            # Fixed set of power-of-two row blocks (8..2048): amortizes per-step grid
            # overhead, no per-call recompiles, VMEM stays tiny even on v7x.
            row_block = min(2048, max(8, _next_pow2(max_group_packed)))

            arrays = tuple(arr for _, arr, _ in work)
            outs = _affine_forward_packed(
                arrays, self.wt_bd, self.b_bd,
                pack=pack, row_block=row_block, groups=groups,
            )
            for (tag, _, _), o in zip(work, outs):
                parts[tag] = o

        return {
            (i, j): (parts[((i, j), 0)], parts[((i, j), 1)])
            for (i, j) in patch_intersection
        }


if __name__ == "__main__":
    dim = 32
    n_patches = 3
    key = jax.random.PRNGKey(0)

    key, k_model = jax.random.split(key)
    model = AffineModel(dim, n_patches, k_model)

    # Small synthetic patch-intersection dict: two overlapping pairs with
    # non-multiple-of-8 point counts (exercises lane packing, grouping by patch id,
    # padding, and the patch-0 identity short-circuit).
    patch_intersection = {}
    for (i, j), n_pts in [((0, 1), 10), ((1, 2), 12)]:
        key, kx, ky = jax.random.split(key, 3)
        X = jax.random.normal(kx, (n_pts, dim), jnp.float32)
        Y = jax.random.normal(ky, (n_pts, dim), jnp.float32)
        patch_intersection[(i, j)] = (X, Y)

    outputs = model(patch_intersection)
    jax.block_until_ready(jax.tree_util.tree_leaves(outputs))

    # Correctness check vs a plain-JAX reference of nn.Linear semantics.
    ok = True
    for (i, j), (X, Y) in patch_intersection.items():
        Xt, Yt = outputs[(i, j)]
        Xt_ref = X @ model.weights[i].T + model.biases[i]
        Yt_ref = Y @ model.weights[j].T + model.biases[j]
        ok &= Xt.shape == Xt_ref.shape and bool(jnp.allclose(Xt, Xt_ref, atol=1e-5))
        ok &= Yt.shape == Yt_ref.shape and bool(jnp.allclose(Yt, Yt_ref, atol=1e-5))

    assert ok, "Pallas affine kernel mismatch vs reference"
    print("KERNEL_OK")
</pallas_src>

<mosaic_0001>
module attributes {stable_mosaic.version = 11 : i64} {
  func.func @_affine_kernel(%arg0: i32, %arg1: memref<2xi32, #tpu.memory_space<smem>>, %arg2: memref<8x128xf32, #tpu.memory_space<vmem>>, %arg3: memref<1x128x128xf32, #tpu.memory_space<vmem>>, %arg4: memref<1x1x128xf32, #tpu.memory_space<vmem>>, %arg5: memref<8x128xf32, #tpu.memory_space<vmem>>) attributes {dimension_semantics = [#tpu.dimension_semantics<parallel>], iteration_bounds = array<i64: 2>, scalar_prefetch = 1 : i64, scratch_operands = 0 : i64, tpu.core_type = #tpu.core_type<tc>, window_params = [{transform_indices = @transform_0, window_bounds = array<i64: 8, 128>}, {transform_indices = @transform_1, window_bounds = array<i64: 1, 128, 128>}, {transform_indices = @transform_2, window_bounds = array<i64: 1, 1, 128>}, {transform_indices = @transform_3, window_bounds = array<i64: 8, 128>}]} {
    %c0 = arith.constant 0 : index
    %c0_0 = arith.constant 0 : index
    %0 = vector.load %arg2[%c0, %c0_0] : memref<8x128xf32, #tpu.memory_space<vmem>>, vector<8x128xf32>
    %c0_1 = arith.constant 0 : index
    %c0_2 = arith.constant 0 : index
    %c0_3 = arith.constant 0 : index
    %1 = vector.load %arg3[%c0_1, %c0_2, %c0_3] : memref<1x128x128xf32, #tpu.memory_space<vmem>>, vector<1x128x128xf32>
    %2 = vector.shape_cast %1 : vector<1x128x128xf32> to vector<128x128xf32>
    %cst = arith.constant dense<0.000000e+00> : vector<8x128xf32>
    %3 = tpu.matmul %0, %2, %cst {dimension_numbers = #tpu.dot_dimension_numbers<[1], [0], [0], [1], [0, 0, 1, 1], [], []>} : vector<8x128xf32>, vector<128x128xf32>, vector<8x128xf32> -> vector<8x128xf32>
    %c0_4 = arith.constant 0 : index
    %c0_5 = arith.constant 0 : index
    %c0_6 = arith.constant 0 : index
    %4 = vector.load %arg4[%c0_4, %c0_5, %c0_6] : memref<1x1x128xf32, #tpu.memory_space<vmem>>, vector<1x1x128xf32>
    %5 = vector.shape_cast %4 : vector<1x1x128xf32> to vector<1x128xf32>
    %6 = vector.broadcast %5 : vector<1x128xf32> to vector<8x128xf32>
    %7 = arith.addf %3, %6 : vector<8x128xf32>
    %c0_7 = arith.constant 0 : index
    %c0_8 = arith.constant 0 : index
    %8 = vector.load %arg5[%c0_7, %c0_8] : memref<8x128xf32, #tpu.memory_space<vmem>>, vector<8x128xf32>
    tpu.vector_store %arg5[%c0_7, %c0_8], %7 {strides = array<i32>} : memref<8x128xf32, #tpu.memory_space<vmem>>, vector<8x128xf32>,
    return
  }
  func.func @transform_0(%arg0: i32, %arg1: memref<2xi32, #tpu.memory_space<smem>>) -> (i32, i32) {
    %c0_i32 = arith.constant 0 : i32
    %c0_i32_0 = arith.constant 0 : i32
    return %arg0, %c0_i32 : i32, i32
  }
  func.func @transform_1(%arg0: i32, %arg1: memref<2xi32, #tpu.memory_space<smem>>) -> (i32, i32, i32) {
    %0 = arith.index_cast %arg0 : i32 to index
    %1 = memref.load %arg1[%0] : memref<2xi32, #tpu.memory_space<smem>>
    %c0_i32 = arith.constant 0 : i32
    %c0_i32_0 = arith.constant 0 : i32
    %c0_i32_1 = arith.constant 0 : i32
    return %1, %c0_i32, %c0_i32_0 : i32, i32, i32
  }
  func.func @transform_2(%arg0: i32, %arg1: memref<2xi32, #tpu.memory_space<smem>>) -> (i32, i32, i32) {
    %0 = arith.index_cast %arg0 : i32 to index
    %1 = memref.load %arg1[%0] : memref<2xi32, #tpu.memory_space<smem>>
    %c0_i32 = arith.constant 0 : i32
    %c0_i32_0 = arith.constant 0 : i32
    %c0_i32_1 = arith.constant 0 : i32
    return %1, %c0_i32, %c0_i32_0 : i32, i32, i32
  }
  func.func @transform_3(%arg0: i32, %arg1: memref<2xi32, #tpu.memory_space<smem>>) -> (i32, i32) {
    %c0_i32 = arith.constant 0 : i32
    %c0_i32_0 = arith.constant 0 : i32
    return %arg0, %c0_i32 : i32, i32
  }
}

</mosaic_0001>

<bundles_post_ra>
// kernel: _affine_forward_packed.1
= control target key start
LH: loop header
LB: loop body
LE: loop exit
PB: predicated region body
PF: predicated region fallthrough
CT: control target
= control target key end

     0   :  { %s800_s0 = inlined_call_operand.vmem [shape: s32[2], index: 0, kind: input, shape index: {}]   ;;  %s801_s1 = inlined_call_operand.vmem [shape: f32[16,128], index: 1, kind: input, shape index: {}]   ;;  %s802_s2 = inlined_call_operand.hbm [shape: f32[3,128,128], index: 2, kind: input, shape index: {}]   ;;  %s803_s3 = inlined_call_operand.vmem [shape: f32[3,1,128], index: 3, kind: input, shape index: {}]   ;;  %s804_s4 = inlined_call_operand.vmem [shape: f32[16,128], index: 4, kind: output, shape index: {}]  }
   0x1   :  { %s9_s17 = sshll.u32 %s800_s0, 4  ;;  %s10_s17 = int_to_ptr.vmem [resolvable:$true] %s9_s17 }
   0x2   :  { %s558_s18 = scalar_lea.vmem %s10_s17, 16  ;;  %p563_p1 = scmp.lt.s32.totalorder %s10_s17, %s10_s17 }
   0x3   :  { %p559_p0 = scmp.ne.s32.totalorder %s10_s17, %s558_s18  ;;  %p564_p2 = scmp.lt.s32.totalorder %s558_s18, %s558_s18 }
   0x5   :  { %p565_p3 = por %p564_p2, %p563_p1 }
   0x7   :  { %p566_p4 = pnand %p565_p3, %p559_p0 }
   0x9   :  { %569 = shalt.err (!%p566_p4)  }
   0xa   :  { %s638_s19 = smov [#allocation3]  }
   0xb   :  { %12 = dma.vmem_to_smem %s10_s17, 16, %s638_s19, [#allocation2] }
   0xc   :  { %616 = dma.done.wait [#allocation2], 16 }
   0xd   :  { %617 = vsyncadd [#allocation2], 4294967280 }
   0xe   :  { %14 = sfence }
   0xf   :  { %15 = vsyncpa [#allocation5], 0 }
  0x10   :  { %17 = vsyncpa [#allocation5 + $0x1], 0  ;;  %s673_s20 = smov 0   ;;  %s675_s21 = smov 0  }
  0x11   :  { %s677_s0 = smov 0   ;;  %s679_s22 = smov 0  }
  0x12 LB: > { %s689_s23 = sadd.s32 4294967295, %s636_s22   ;;  %s691_s24 = sadd.s32 1, %s636_s22   ;;  %s636_s22 = sphi %s679_s22, %s813_s22   ;;  %s632_s0 = sphi %s677_s0, %s812_s0   ;;  %s628_s21 = sphi %s675_s21, %s811_s21   ;;  %s624_s20 = sphi %s673_s20, %s810_s20  }
  0x13   : > { %s53_s25 = sld [smem:[#allocation3 + %s636_s22]]  ;;  %p65_p5 = scmp.ne.s32.totalorder %s632_s0, %s628_s21 }
  0x14   : > { %s54_s26 = sld [smem:[#allocation3 + %s691_s24]]  ;;  %p66_p6 = scmp.eq.s32.totalorder %s636_s22, 0 }
  0x15   : > { %p71_p7 = scmp.ne.s32.totalorder %s628_s21, %s624_s20  ;;  %p72_p8 = scmp.eq.s32.totalorder %s689_s23, 0 }
  0x16   : > { %s58_s27 = sadd.s32 1, %s632_s0  ;;  %p67_p9 = por %p66_p6, %p65_p5 }
  0x17   : > { %p699_p10 = por %p72_p8, %p71_p7  ;;  %s156_s29 = sand.u32 1, %s632_s0  }
  0x18   : > { %p519_p11 = scmp.lt.s32.totalorder %s636_s22, 2  ;;  %s422_s5 = sshll.u32 %s156_s29, 7 }
  0x19   : > { %s806_s28 = scalar_select %p699_p10, 1, 0 }
  0x1a   : > { %s55_s30 = ssub.s32 %s53_s25, %s54_s26  ;;  %p704_p13 = pnand %p519_p11, %p67_p9 }
  0x1b   : > { %p56_p12 = scmp.eq.s32.totalorder %s55_s30, 0  ;;  %s160_s11 = scalar_lea.vmem [#allocation4], %s422_s5 }
  0x1c   : > { %s509_s8 = scalar_select %p67_p9, [#allocation3], [#allocation6] }
  0x1d   : > { %s709_s7 = scalar_select %p56_p12, %s632_s0, %s58_s27  }
  0x1e   : > { %s510_s9 = scalar_select %p67_p9, %s636_s22, 0 }
  0x1f   : > { %s815_s8 = smov (!%p519_p11, %s509_s8), [#allocation7]  ;;  %s168_s12 = sshll.u32 %s160_s11, 4  ;;  %s711_s12 = int_to_ptr.vmem [resolvable:$true] %s168_s12 }
  0x20   : > { %s817_s9 = smov (!%p519_p11, %s510_s9), 0  ;;  %p425_p0 = scmp.ge.s32.totalorder %s636_s22, 1 }
  0x21   : > { %s161_s10 = sld [smem:[%s815_s8 + %s817_s9]]  ;;  %p184_p1 = scmp.lt.s32.totalorder %s636_s22, 3 }
  0x22   : > { %s722_s18 = scalar_lea.sflag [#allocation5], %s156_s29  ;;  %p572_p4 = pneg %p704_p13 }
  0x23   : > { %p713_p2 = pnand %p425_p0, %p184_p1  ;;  %s575_s25 = scalar_lea.hbm %s802_s2, 6144 }
  0x27   : > { %s432_s14 = sshll.u32 %s161_s10, 11 }
  0x28   : > { %s720_s17 = scalar_lea.hbm %s802_s2, %s432_s14 }
  0x29   : > { %s570_s19 = scalar_lea.hbm %s720_s17, 2048  ;;  %p576_p7 = scmp.lt.u32.totalorder %s720_s17, %s802_s2 }
  0x2a   : > { %p571_p3 = scmp.ne.s32.totalorder %s720_s17, %s570_s19  ;;  %p577_p8 = scmp.lt.u32.totalorder %s575_s25, %s570_s19 }
  0x2b   : > { %p579_p11 = scmp.lt.u32.totalorder %s570_s19, %s720_s17 }
  0x2c   : > { %p573_p5 = pnand %p572_p4, %p571_p3  ;;  %p578_p9 = por %p577_p8, %p576_p7 }
  0x2e   : > { %p574_p6 = pneg %p573_p5  ;;  %p580_p12 = por %p579_p11, %p578_p9 }
  0x30   : > { %p581_p0 = pnand %p580_p12, %p574_p6 }
  0x32   : > { %584 = shalt.err (!%p581_p0)
}
  0x33   : > { %s585_s29 = scalar_lea.vmem %s711_s12, 2048  ;;  %s639_s30 = smov [#allocation4]  }
  0x34   : > { %p586_p1 = scmp.ne.s32.totalorder %s711_s12, %s585_s29  ;;  %s590_s5 = sshll.u32 %s639_s30, 4  ;;  %s591_s5 = int_to_ptr.vmem [resolvable:$false] %s590_s5 }
  0x35   : > { %s592_s8 = scalar_lea.vmem %s591_s5, 4096  ;;  %p593_p10 = scmp.lt.s32.totalorder %s711_s12, %s591_s5 }
  0x36   : > { %p588_p3 = pnand %p586_p1, %p572_p4  ;;  %p594_p7 = scmp.lt.s32.totalorder %s592_s8, %s585_s29 }
  0x38   : > { %p589_p5 = pneg %p588_p3  ;;  %p595_p8 = por %p594_p7, %p593_p10 }
  0x3a   : > { %p596_p9 = pnand %p595_p8, %p589_p5 }
  0x3c   : > { %599 = shalt.err (!%p596_p9)
}
  0x3d   : > { %s640_s9 = smov 128   ;;  %s641_s10 = smov 8  }
  0x3e   : > { %518 = dma.hbm_to_vmem [thread:$0]  (!%p704_p13), %s720_s17, 2048, %s711_s12, %s722_s18, %s640_s9, %s640_s9, %s641_s10  }
  0x3f   : > { %188 = sbr.rel (%p713_p2) target bundleno = 320 (0x140), region = 32  ;;  %s190_s11 = sand.u32 (!%p713_p2), 1, %s628_s21  }
  0x40   : > { %s426_s14 = sshll.u32 (!%p713_p2), %s190_s11, 7  ;;  %s191_s15 = scalar_lea.sflag (!%p713_p2), [#allocation5], %s190_s11 }
  0x41   : > { %s753_s16 = scalar_lea.vmem (!%p713_p2), [#allocation4], %s426_s14  ;;  %p809_p10 = scmp.ne.s32.totalorder (!%p713_p2), %s806_s28, 0 }
  0x46   : > { %619 = dma.done.wait (%p809_p10), %s191_s15, 2048  }
  0x47   : > { %621 = vsyncadd (%p809_p10), %s191_s15, 4294965248  ;;  %v642_v0 = vmov 0.0|0.0   ;;  %vm643_vm0 = vmmov 0   ;;  %v644_v1 = vmov 0.0   ;;  %v239_v2 = vld [vmem:[%s753_s16] sm:$0xff]  ;;  %v240_v3 = vld [vmem:[%s753_s16 + $0x8] sm:$0xff] }
  0x48   : > { %485 = vmatprep.subr.bf16.mxu0 %v642_v0  ;;  %482 = vmatprep.mubr.msk.f32.mxu0 %vm643_vm0, %v644_v1  ;;  %v241_v4 = vld [vmem:[%s753_s16 + $0x10] sm:$0xff]  ;;  %v486_v5 = vpack.c.bf16 %v240_v3, %v239_v2  ;;  %v242_v6 = vld [vmem:[%s753_s16 + $0x18] sm:$0xff]  ;;  %v243_v8 = vld [vmem:[%s753_s16 + $0x20] sm:$0xff]  ;;  %p224_p13 = scmp.lt.s32.totalorder %s689_s23, 1  ;;  %s229_s18 = sld [smem:[#allocation3 + %s689_s23]] }
  0x49   : > { %v489_v7 = vpack.c.bf16 %v242_v6, %v241_v4  ;;  %v244_v9 = vld [vmem:[%s753_s16 + $0x28] sm:$0xff]  ;;  %v245_v11 = vld [vmem:[%s753_s16 + $0x30] sm:$0xff]  ;;  %v246_v12 = vld [vmem:[%s753_s16 + $0x38] sm:$0xff] }
  0x4a   : > { %487 = vmatpush3.bf16.msra.mxu0 %v486_v5  ;;  %v492_v10 = vpack.c.bf16 %v244_v9, %v243_v8  ;;  %v495_v13 = vpack.c.bf16 %v246_v12, %v245_v11  ;;  %v247_v14 = vld [vmem:[%s753_s16 + $0x40] sm:$0xff]  ;;  %v248_v15 = vld [vmem:[%s753_s16 + $0x48] sm:$0xff]  ;;  %v249_v17 = vld [vmem:[%s753_s16 + $0x50] sm:$0xff]  ;;  %s225_s28 = scalar_select %p224_p13, %s689_s23, 1 }
  0x4b   : > { %488 = vmatprep.subr.bf16.mxu0 %v642_v0  ;;  %v498_v16 = vpack.c.bf16 %v248_v15, %v247_v14  ;;  %v250_v18 = vld [vmem:[%s753_s16 + $0x58] sm:$0xff]  ;;  %v251_v20 = vld [vmem:[%s753_s16 + $0x60] sm:$0xff]  ;;  %v252_v21 = vld [vmem:[%s753_s16 + $0x68] sm:$0xff] }
  0x4c   : > { %v501_v19 = vpack.c.bf16 %v250_v18, %v249_v17  ;;  %v504_v22 = vpack.c.bf16 %v252_v21, %v251_v20  ;;  %v253_v23 = vld [vmem:[%s753_s16 + $0x70] sm:$0xff]  ;;  %v254_v24 = vld [vmem:[%s753_s16 + $0x78] sm:$0xff]  ;;  %s427_s6 = sshll.u32 %s225_s28, 3 }
  0x4d   : > { %v507_v25 = vpack.c.bf16 %v254_v24, %v253_v23  ;;  %s227_s17 = scalar_lea.vmem %s801_s1, %s427_s6  ;;  %s237_s27 = scalar_lea.vmem %s804_s4, %s427_s6 }
  0x4e   : > { %490 = vmatpush3.bf16.msra.mxu0 %v489_v7  ;;  %v238_v26 = vld [vmem:[%s227_s17] sm:$0xff]  ;;  %p230_p2 = scmp.lt.s32.totalorder %s229_s18, 2 }
  0x4f   : > { %491 = vmatprep.subr.bf16.mxu0 %v642_v0 }
  0x50   : > { %s819_s18 = smov (!%p230_p2, %s229_s18), 2 }
  0x51   : > { %s232_s22 = scalar_lea.vmem %s803_s3, %s819_s18 }
  0x52   : > { %493 = vmatpush3.bf16.msra.mxu0 %v492_v10  ;;  %v429_v27 = vld [vmem:[%s232_s22] ss:$0 sm:$0xff] }
  0x53   : > { %494 = vmatprep.subr.bf16.mxu0 %v642_v0 }
  0x56   : > { %496 = vmatpush3.bf16.msra.mxu0 %v495_v13 }
  0x57   : > { %497 = vmatprep.subr.bf16.mxu0 %v642_v0 }
  0x5a   : > { %499 = vmatpush3.bf16.msra.mxu0 %v498_v16 }
  0x5b   : > { %500 = vmatprep.subr.bf16.mxu0 %v642_v0 }
  0x5e   : > { %502 = vmatpush3.bf16.msra.mxu0 %v501_v19 }
  0x5f   : > { %503 = vmatprep.subr.bf16.mxu0 %v642_v0 }
  0x62   : > { %505 = vmatpush3.bf16.msra.mxu0 %v504_v22 }
  0x63   : > { %506 = vmatprep.subr.bf16.mxu0 %v642_v0 }
  0x66   : > { %508 = vmatpush3.bf16.msra.mxu0 %v507_v25 }
  0x69   : > { %483 = vmatmul.mubr.f32.vlgmr.msra.gmra.mrb[0].mxu0 %v238_v26 }
 0x13c   : > { %v328_v28 = vpop.f32.mrb[0].mxu0 }
 0x13d   : > { %v329_v29 = vadd.f32 %v429_v27, %v328_v28  ;;  %v484_v30 = vpop.f32.mrb[1].mxu0 }
 0x13f   : > { %332 = vst [vmem:[%s237_s27] sm:$0xff] %v329_v29 }
 0x140 PF: > { %p20_p4 = scmp.ge.s32.totalorder %s691_s24, 4   ;;  %s810_s20 = smov %s628_s21 }
 0x141   : > { %s811_s21 = smov %s632_s0  ;;  %s812_s0 = smov %s709_s7 }
 0x142   : > { %s813_s22 = smov %s691_s24  ;;  %22 = sbr.rel (!%p20_p4) target bundleno = 18 (0x12), region = 78 }
 0x149   :  { %352 = vsyncpa [#allocation5], 1 }
 0x14a   :  { %354 = vsyncpa [#allocation5 + $0x1], 1 }

</bundles_post_ra>
